<compile_context>
chip_gen: v7x
topology: tpu7x:2x2x1
jax: 0.10.0
libtpu: 0.0.40
codegen_flags: <defaults>
</compile_context>

<pallas_src>
import jax
import jax.numpy as jnp
from jax import lax
from jax.experimental import pallas as pl
from jax.experimental.pallas import tpu as pltpu


def _head_attention_kernel(q_ref, k_ref, v_ref, wq_ref, wk_ref, wv_ref, o_ref):
    # q_ref: (B, TQ, E), k_ref/v_ref: (B, S, E), w*_ref: (E, H), o_ref: (B, TQ, H)
    q = q_ref[...]
    k = k_ref[...]
    v = v_ref[...]
    wq = wq_ref[...]
    wk = wk_ref[...]
    wv = wv_ref[...]

    head_dim = wq.shape[-1]

    # Linear projections: (B, S, E) @ (E, H) -> (B, S, H); MXU, f32 accumulation,
    # no transpose (weights already (E, H)).
    proj_dims = (((2,), (0,)), ((), ()))
    qp = lax.dot_general(q, wq, proj_dims, preferred_element_type=jnp.float32)
    kp = lax.dot_general(k, wk, proj_dims, preferred_element_type=jnp.float32)
    vp = lax.dot_general(v, wv, proj_dims, preferred_element_type=jnp.float32)

    # attn_scores = (q @ k^T) * q.shape[-1]   (module quirk: * head_dim, not rsqrt)
    # Contract over H of both operands, batch over B -> kp is never transposed.
    scores = lax.dot_general(
        qp, kp, (((2,), (2,)), ((0,), (0,))), preferred_element_type=jnp.float32
    ) * jnp.float32(head_dim)

    # Numerically-stable softmax over the key axis (exact divide: the approximate
    # EUP reciprocal is not accurate enough for the correctness check and buys
    # nothing at these shapes).
    scores = scores - jnp.max(scores, axis=-1, keepdims=True)
    p = jnp.exp(scores)
    p = p / jnp.sum(p, axis=-1, keepdims=True)

    # attn_output = p @ v_proj : (B, TQ, S) @ (B, S, H) -> (B, TQ, H)
    out = lax.dot_general(
        p.astype(vp.dtype), vp, (((2,), (1,)), ((0,), (0,))),
        preferred_element_type=jnp.float32,
    )
    o_ref[...] = out.astype(o_ref.dtype)


def head_attention(q, k, v, wq, wk, wv):
    """q, k, v: (B, S, E); wq/wk/wv: nn.Linear layout (head_dim, E).

    Returns (B, S, head_dim). mask=None path only.
    """
    B, S, E = q.shape
    H = wq.shape[0]

    # Pre-transpose weights once in the wrapper (free plumbing) -> (E, H).
    wq_t = wq.T
    wk_t = wk.T
    wv_t = wv.T

    # Tiny-shape regime: fold the whole batch into each grid step and tile only
    # the query axis. For the test shapes this collapses to a single grid step.
    if S <= 256:
        block_q = S
    else:
        block_q = 256 if S % 256 == 0 else S
    num_q_blocks = S // block_q

    grid_spec = pltpu.PrefetchScalarGridSpec(
        num_scalar_prefetch=0,
        grid=(num_q_blocks,),
        in_specs=[
            pl.BlockSpec((B, block_q, E), lambda i: (0, i, 0)),   # q tile
            pl.BlockSpec((B, S, E), lambda i: (0, 0, 0)),         # full K
            pl.BlockSpec((B, S, E), lambda i: (0, 0, 0)),         # full V
            pl.BlockSpec((E, H), lambda i: (0, 0)),               # Wq (resident)
            pl.BlockSpec((E, H), lambda i: (0, 0)),               # Wk (resident)
            pl.BlockSpec((E, H), lambda i: (0, 0)),               # Wv (resident)
        ],
        out_specs=pl.BlockSpec((B, block_q, H), lambda i: (0, i, 0)),
    )

    return pl.pallas_call(
        _head_attention_kernel,
        out_shape=jax.ShapeDtypeStruct((B, S, H), q.dtype),
        grid_spec=grid_spec,
        compiler_params=pltpu.CompilerParams(
            dimension_semantics=("parallel",)),
    )(q, k, v, wq_t, wk_t, wv_t)


def _reference(q, k, v, wq, wk, wv):
    # Pure-JAX reference mirroring the PyTorch forward (mask=None).
    # HIGHEST precision so the reference itself is accurate f32 on real TPUs.
    hp = lax.Precision.HIGHEST
    qp = jnp.einsum("bse,he->bsh", q, wq, precision=hp)
    kp = jnp.einsum("bse,he->bsh", k, wk, precision=hp)
    vp = jnp.einsum("bse,he->bsh", v, wv, precision=hp)
    scores = jnp.einsum("bqh,bkh->bqk", qp, kp, precision=hp) * qp.shape[-1]
    w = jax.nn.softmax(scores, axis=-1)
    return jnp.einsum("bqk,bkh->bqh", w, vp, precision=hp)


if __name__ == "__main__":
    # Module config: embedding_dim=32, num_heads=4, model_dim=32 -> head_dim=8
    embedding_dim = 32
    num_heads = 4
    model_dim = 32
    head_dim = model_dim // num_heads

    B, S = 2, 8

    key = jax.random.PRNGKey(0)
    kq, kk, kv, kwq, kwk, kwv = jax.random.split(key, 6)

    q = jax.random.normal(kq, (B, S, embedding_dim), dtype=jnp.float32)
    k = jax.random.normal(kk, (B, S, embedding_dim), dtype=jnp.float32)
    v = jax.random.normal(kv, (B, S, embedding_dim), dtype=jnp.float32)

    # Deterministic nn.Linear-style init: U(-1/sqrt(fan_in), 1/sqrt(fan_in))
    bound = 1.0 / (embedding_dim ** 0.5)
    wq = jax.random.uniform(kwq, (head_dim, embedding_dim), jnp.float32, -bound, bound)
    wk = jax.random.uniform(kwk, (head_dim, embedding_dim), jnp.float32, -bound, bound)
    wv = jax.random.uniform(kwv, (head_dim, embedding_dim), jnp.float32, -bound, bound)

    out = head_attention(q, k, v, wq, wk, wv)
    out = jax.block_until_ready(out)

    ref = _reference(q, k, v, wq, wk, wv)
    assert out.shape == (B, S, head_dim)
    assert jnp.allclose(out, ref, atol=1e-3, rtol=1e-3), "mismatch vs reference"

    print("KERNEL_OK")
</pallas_src>

<mosaic_0001>
module attributes {stable_mosaic.version = 11 : i64} {
  func.func @_head_attention_kernel(%arg0: i32, %arg1: memref<2x8x32xf32, #tpu.memory_space<vmem>>, %arg2: memref<2x8x32xf32, #tpu.memory_space<vmem>>, %arg3: memref<2x8x32xf32, #tpu.memory_space<vmem>>, %arg4: memref<32x8xf32, #tpu.memory_space<vmem>>, %arg5: memref<32x8xf32, #tpu.memory_space<vmem>>, %arg6: memref<32x8xf32, #tpu.memory_space<vmem>>, %arg7: memref<2x8x8xf32, #tpu.memory_space<vmem>>) attributes {dimension_semantics = [#tpu.dimension_semantics<parallel>], iteration_bounds = array<i64: 1>, scalar_prefetch = 0 : i64, scratch_operands = 0 : i64, tpu.core_type = #tpu.core_type<tc>, window_params = [{transform_indices = @transform_0, window_bounds = array<i64: 2, 8, 32>}, {pipeline_mode = #tpu.pipeline_mode<synchronous>, transform_indices = @transform_1, window_bounds = array<i64: 2, 8, 32>}, {pipeline_mode = #tpu.pipeline_mode<synchronous>, transform_indices = @transform_2, window_bounds = array<i64: 2, 8, 32>}, {pipeline_mode = #tpu.pipeline_mode<synchronous>, transform_indices = @transform_3, window_bounds = array<i64: 32, 8>}, {pipeline_mode = #tpu.pipeline_mode<synchronous>, transform_indices = @transform_4, window_bounds = array<i64: 32, 8>}, {pipeline_mode = #tpu.pipeline_mode<synchronous>, transform_indices = @transform_5, window_bounds = array<i64: 32, 8>}, {transform_indices = @transform_6, window_bounds = array<i64: 2, 8, 8>}]} {
    %c0 = arith.constant 0 : index
    %c0_0 = arith.constant 0 : index
    %c0_1 = arith.constant 0 : index
    %0 = vector.load %arg1[%c0, %c0_0, %c0_1] : memref<2x8x32xf32, #tpu.memory_space<vmem>>, vector<2x8x32xf32>
    %c0_2 = arith.constant 0 : index
    %c0_3 = arith.constant 0 : index
    %c0_4 = arith.constant 0 : index
    %1 = vector.load %arg2[%c0_2, %c0_3, %c0_4] : memref<2x8x32xf32, #tpu.memory_space<vmem>>, vector<2x8x32xf32>
    %c0_5 = arith.constant 0 : index
    %c0_6 = arith.constant 0 : index
    %c0_7 = arith.constant 0 : index
    %2 = vector.load %arg3[%c0_5, %c0_6, %c0_7] : memref<2x8x32xf32, #tpu.memory_space<vmem>>, vector<2x8x32xf32>
    %c0_8 = arith.constant 0 : index
    %c0_9 = arith.constant 0 : index
    %3 = vector.load %arg4[%c0_8, %c0_9] : memref<32x8xf32, #tpu.memory_space<vmem>>, vector<32x8xf32>
    %c0_10 = arith.constant 0 : index
    %c0_11 = arith.constant 0 : index
    %4 = vector.load %arg5[%c0_10, %c0_11] : memref<32x8xf32, #tpu.memory_space<vmem>>, vector<32x8xf32>
    %c0_12 = arith.constant 0 : index
    %c0_13 = arith.constant 0 : index
    %5 = vector.load %arg6[%c0_12, %c0_13] : memref<32x8xf32, #tpu.memory_space<vmem>>, vector<32x8xf32>
    %cst = arith.constant dense<0.000000e+00> : vector<2x8x8xf32>
    %6 = tpu.matmul %0, %3, %cst {dimension_numbers = #tpu.dot_dimension_numbers<[2], [0], [0, 1], [1], [0, 0, 0, 1, 1, 1], [], []>} : vector<2x8x32xf32>, vector<32x8xf32>, vector<2x8x8xf32> -> vector<2x8x8xf32>
    %cst_14 = arith.constant dense<0.000000e+00> : vector<2x8x8xf32>
    %7 = tpu.matmul %1, %4, %cst_14 {dimension_numbers = #tpu.dot_dimension_numbers<[2], [0], [0, 1], [1], [0, 0, 0, 1, 1, 1], [], []>} : vector<2x8x32xf32>, vector<32x8xf32>, vector<2x8x8xf32> -> vector<2x8x8xf32>
    %cst_15 = arith.constant dense<0.000000e+00> : vector<2x8x8xf32>
    %8 = tpu.matmul %2, %5, %cst_15 {dimension_numbers = #tpu.dot_dimension_numbers<[2], [0], [0, 1], [1], [0, 0, 0, 1, 1, 1], [], []>} : vector<2x8x32xf32>, vector<32x8xf32>, vector<2x8x8xf32> -> vector<2x8x8xf32>
    %cst_16 = arith.constant dense<0.000000e+00> : vector<2x8x8xf32>
    %9 = tpu.matmul %6, %7, %cst_16 {dimension_numbers = #tpu.dot_dimension_numbers<[2], [2], [1], [1], [0, 0, 0, 1, 1, 1], [0], [0]>} : vector<2x8x8xf32>, vector<2x8x8xf32>, vector<2x8x8xf32> -> vector<2x8x8xf32>
    %cst_17 = arith.constant 8.000000e+00 : f32
    %10 = vector.broadcast %cst_17 : f32 to vector<2x8x8xf32>
    %11 = arith.mulf %9, %10 : vector<2x8x8xf32>
    %cst_18 = arith.constant dense<0xFF800000> : vector<2x8xf32>
    %12 = vector.multi_reduction <maximumf>, %11, %cst_18 [2] : vector<2x8x8xf32> to vector<2x8xf32>
    %13 = vector.shape_cast %12 : vector<2x8xf32> to vector<2x8x1xf32>
    %14 = vector.broadcast %13 : vector<2x8x1xf32> to vector<2x8x8xf32>
    %15 = arith.subf %11, %14 : vector<2x8x8xf32>
    %16 = math.exp %15 : vector<2x8x8xf32>
    %cst_19 = arith.constant dense<0.000000e+00> : vector<2x8xf32>
    %17 = vector.multi_reduction <add>, %16, %cst_19 [2] : vector<2x8x8xf32> to vector<2x8xf32>
    %18 = vector.shape_cast %17 : vector<2x8xf32> to vector<2x8x1xf32>
    %19 = vector.broadcast %18 : vector<2x8x1xf32> to vector<2x8x8xf32>
    %20 = arith.divf %16, %19 : vector<2x8x8xf32>
    %cst_20 = arith.constant dense<0.000000e+00> : vector<2x8x8xf32>
    %21 = tpu.matmul %20, %8, %cst_20 {dimension_numbers = #tpu.dot_dimension_numbers<[2], [1], [1], [2], [0, 0, 0, 1, 1, 2], [0], [0]>} : vector<2x8x8xf32>, vector<2x8x8xf32>, vector<2x8x8xf32> -> vector<2x8x8xf32>
    %c0_21 = arith.constant 0 : index
    %c0_22 = arith.constant 0 : index
    %c0_23 = arith.constant 0 : index
    %22 = vector.load %arg7[%c0_21, %c0_22, %c0_23] : memref<2x8x8xf32, #tpu.memory_space<vmem>>, vector<2x8x8xf32>
    tpu.vector_store %arg7[%c0_21, %c0_22, %c0_23], %21 {strides = array<i32>} : memref<2x8x8xf32, #tpu.memory_space<vmem>>, vector<2x8x8xf32>,
    return
  }
  func.func @transform_0(%arg0: i32) -> (i32, i32, i32) {
    %c0_i32 = arith.constant 0 : i32
    %c0_i32_0 = arith.constant 0 : i32
    %c0_i32_1 = arith.constant 0 : i32
    return %c0_i32, %arg0, %c0_i32_0 : i32, i32, i32
  }
  func.func @transform_1(%arg0: i32) -> (i32, i32, i32) {
    %c0_i32 = arith.constant 0 : i32
    %c0_i32_0 = arith.constant 0 : i32
    %c0_i32_1 = arith.constant 0 : i32
    %c0_i32_2 = arith.constant 0 : i32
    return %c0_i32, %c0_i32_0, %c0_i32_1 : i32, i32, i32
  }
  func.func @transform_2(%arg0: i32) -> (i32, i32, i32) {
    %c0_i32 = arith.constant 0 : i32
    %c0_i32_0 = arith.constant 0 : i32
    %c0_i32_1 = arith.constant 0 : i32
    %c0_i32_2 = arith.constant 0 : i32
    return %c0_i32, %c0_i32_0, %c0_i32_1 : i32, i32, i32
  }
  func.func @transform_3(%arg0: i32) -> (i32, i32) {
    %c0_i32 = arith.constant 0 : i32
    %c0_i32_0 = arith.constant 0 : i32
    %c0_i32_1 = arith.constant 0 : i32
    return %c0_i32, %c0_i32_0 : i32, i32
  }
  func.func @transform_4(%arg0: i32) -> (i32, i32) {
    %c0_i32 = arith.constant 0 : i32
    %c0_i32_0 = arith.constant 0 : i32
    %c0_i32_1 = arith.constant 0 : i32
    return %c0_i32, %c0_i32_0 : i32, i32
  }
  func.func @transform_5(%arg0: i32) -> (i32, i32) {
    %c0_i32 = arith.constant 0 : i32
    %c0_i32_0 = arith.constant 0 : i32
    %c0_i32_1 = arith.constant 0 : i32
    return %c0_i32, %c0_i32_0 : i32, i32
  }
  func.func @transform_6(%arg0: i32) -> (i32, i32, i32) {
    %c0_i32 = arith.constant 0 : i32
    %c0_i32_0 = arith.constant 0 : i32
    %c0_i32_1 = arith.constant 0 : i32
    return %c0_i32, %arg0, %c0_i32_0 : i32, i32, i32
  }
}

</mosaic_0001>

<bundles_post_ra>
// kernel: tpu_custom_call.1
= control target key start
LH: loop header
LB: loop body
LE: loop exit
PB: predicated region body
PF: predicated region fallthrough
CT: control target
= control target key end

     0   :  { %vm42_vm0 = vcmask 261120   ;;  %s907_s0 = inlined_call_operand.vmem [shape: f32[2,8,32], index: 0, kind: input, shape index: {}]   ;;  %s908_s1 = inlined_call_operand.vmem [shape: f32[2,8,32], index: 1, kind: input, shape index: {}]   ;;  %s909_s2 = inlined_call_operand.vmem [shape: f32[2,8,32], index: 2, kind: input, shape index: {}]   ;;  %s910_s3 = inlined_call_operand.vmem [shape: f32[32,8], index: 3, kind: input, shape index: {}]   ;;  %s911_s4 = inlined_call_operand.vmem [shape: f32[32,8], index: 4, kind: input, shape index: {}]   ;;  %s912_s5 = inlined_call_operand.vmem [shape: f32[32,8], index: 5, kind: input, shape index: {}]   ;;  %s913_s6 = inlined_call_operand.hbm [shape: f32[2,8,8], index: 6, kind: output, shape index: {}]  }
   0x1   :  { %v34_v0 = vld [vmem:[%s911_s4] sm:$0xff]  ;;  %v35_v1 = vld [vmem:[%s911_s4 + $0x8] sm:$0xff]  ;;  %v36_v5 = vld [vmem:[%s911_s4 + $0x10] sm:$0xff] }
   0x2   :  { %v30_v2 = vld [vmem:[%s910_s3] sm:$0xff]  ;;  %v726_v3 = vpack.c.bf16 %v35_v1, %v34_v0  ;;  %v31_v4 = vld [vmem:[%s910_s3 + $0x8] sm:$0xff]  ;;  %v37_v6 = vld [vmem:[%s911_s4 + $0x18] sm:$0xff] }
   0x3   :  { %v718_v7 = vpack.c.bf16 %v31_v4, %v30_v2  ;;  %v730_v8 = vpack.c.bf16 %v37_v6, %v36_v5  ;;  %v32_v9 = vld [vmem:[%s910_s3 + $0x10] sm:$0xff]  ;;  %v33_v10 = vld [vmem:[%s910_s3 + $0x18] sm:$0xff]  ;;  %v26_v11 = vld [vmem:[%s908_s1] sm:$0xff] }
   0x4   :  { %727 = vmatprep.subr.bf16.mxu1 %v726_v3  ;;  %v722_v12 = vpack.c.bf16 %v33_v10, %v32_v9  ;;  %684 = vmatprep.mubr.msk.f32.mxu1 %vm42_vm0, %v26_v11  ;;  %v24_v13 = vld [vmem:[%s907_s0] sm:$0xff] }
   0x5   :  { %729 = vmatpush3.bf16.msra.mxu1 %v726_v3  ;;  %719 = vmatprep.subr.bf16.mxu0 %v718_v7 }
   0x6   :  { %11 = vsyncpa [#allocation3], 0  ;;  %721 = vmatpush3.bf16.msra.mxu0 %v718_v7  ;;  %731 = vmatprep.subr.bf16.mxu1 %v730_v8  ;;  %v27_v14 = vld [vmem:[%s908_s1 + $0x8] sm:$0xff]  ;;  %v779_v16 = vmov 0.0   ;;  %vm780_vm1 = vmmov 0   ;;  %vm286_vm2 = vcmask 64512  }
   0x7   :  { %723 = vmatprep.subr.bf16.mxu0 %v722_v12  ;;  %673 = vmatprep.mubr.msk.f32.mxu0 %vm42_vm0, %v24_v13  ;;  %v25_v15 = vld [vmem:[%s907_s0 + $0x8] sm:$0xff]  ;;  %v38_v21 = vld [vmem:[%s912_s5] sm:$0xff]  ;;  %v40_v23 = vld [vmem:[%s912_s5 + $0x10] sm:$0xff] }
   0x8   :  { %v39_v22 = vld [vmem:[%s912_s5 + $0x8] sm:$0xff]  ;;  %v41_v25 = vld [vmem:[%s912_s5 + $0x18] sm:$0xff]  ;;  %v28_v26 = vld [vmem:[%s909_s2] sm:$0xff] }
   0x9   :  { %733 = vmatpush3.bf16.msra.mxu1 %v730_v8  ;;  %v734_v24 = vpack.c.bf16 %v39_v22, %v38_v21  ;;  %v738_v27 = vpack.c.bf16 %v41_v25, %v40_v23  ;;  %v29_v28 = vld [vmem:[%s909_s2 + $0x8] sm:$0xff]  ;;  %s781_s2 = smov [#allocation2]  }
   0xa   :  { %725 = vmatpush3.bf16.msra.mxu0 %v722_v12  ;;  %698 = vmatprep.subr.mxu1 %v779_v16  ;;  %s616_s5 = sshll.u32 %s781_s2, 4  ;;  %s617_s5 = int_to_ptr.vmem [resolvable:$true] %s616_s5 }
   0xb   :  { %735 = vmatprep.subr.bf16.mxu0 %v734_v24  ;;  %s755_s29 = scalar_lea.vmem %s617_s5, 256  ;;  %p760_p1 = scmp.lt.s32.totalorder %s617_s5, %s617_s5 }
   0xc   :  { %685 = vmatmul.mubr.msk.f32.vlgmr.msra.gmra.mrb[0].mxu1 %vm42_vm0, %v27_v14  ;;  %p756_p0 = scmp.ne.s32.totalorder %s617_s5, %s755_s29  ;;  %p761_p2 = scmp.lt.s32.totalorder %s755_s29, %s755_s29 }
   0xd   :  { %674 = vmatmul.mubr.msk.f32.vlgmr.msra.gmra.mrb[0].mxu0 %vm42_vm0, %v25_v15  ;;  %700 = vmatprep.mubr.msk.f32.mxu1 %vm780_vm1, %v779_v16 }
   0xe   :  { %695 = vmatprep.mubr.msk.f32.mxu0 %vm42_vm0, %v28_v26  ;;  %737 = vmatpush3.bf16.msra.mxu0 %v734_v24  ;;  %p762_p3 = por %p761_p2, %p760_p1 }
   0xf   :  { %739 = vmatprep.subr.bf16.mxu0 %v738_v27 }
  0x10   :  { %p763_p4 = pnand %p762_p3, %p756_p0 }
  0x12   :  { %741 = vmatpush3.bf16.msra.mxu0 %v738_v27 }
  0x13   :  { %708 = vmatprep.subr.mxu0 %v779_v16 }
  0x15   :  { %696 = vmatmul.mubr.msk.f32.vlgmr.msra.gmra.mrb[2].mxu0 %vm42_vm0, %v29_v28 }
  0x16   :  { %710 = vmatprep.mubr.msk.f32.mxu0 %vm780_vm1, %v779_v16 }
  0xdf   :  { %v686_v17 = vpop.f32.mrb[0].mxu1 }
  0xe0   :  { %v196_v18 = vpop.f32.mrb[1].mxu1  ;;  %v675_v19 = vpop.f32.mrb[0].mxu0 }
  0xe1   :  { %699 = vmatpush3.xpose.msk.msra.mxu1 %vm286_vm2, %v196_v18  ;;  %v115_v20 = vpop.f32.mrb[1].mxu0 }
  0xe2   :  { %703 = vmatprep.subr.mxu1 %v779_v16 }
  0xe4   :  { %701 = vmatmul.mubr.msk.f32.vlgmr.msra.gmra.mrb[2].mxu1 %vm286_vm2, %v115_v20 }
  0xe5   :  { %704 = vmatpush3.xpose.msk.msra.mxu1 %vm286_vm2, %v686_v17  ;;  %705 = vmatprep.mubr.msk.f32.mxu1 %vm780_vm1, %v779_v16 }
  0xe6   :  { %713 = vmatprep.subr.mxu1 %v779_v16 }
  0xe8   :  { %706 = vmatmul.mubr.msk.f32.vlgmr.msra.gmra.mrb[4].mxu1 %vm286_vm2, %v675_v19  ;;  %v697_v47 = vpop.f32.mrb[2].mxu0 }
  0xe9   :  { %715 = vmatprep.mubr.msk.f32.mxu1 %vm780_vm1, %v779_v16  ;;  %v277_v48 = vpop.f32.mrb[3].mxu0  ;;  %714 = vmatpush3.msra.mxu1 %v697_v47 }
  0xea   :  { %709 = vmatpush3.msra.mxu0 %v277_v48 }
 0x1b7   :  { %v359_v29 = vpop.f32.mrb[2].mxu1 }
 0x1b8   :  { %v439_v30 = vmul.f32 8.0, %v359_v29  ;;  %v702_v31 = vpop.f32.mrb[3].mxu1 }
 0x1ba   :  { %v441_v32 = vsel %vm286_vm2, %v439_v30, -inf }
 0x1bb   :  { %442 = vmax.xlane.f32.xlu0 %v441_v32  ;;  %v435_v33 = vpop.f32.mrb[4].mxu1 }
 0x1bc   :  { %v440_v34 = vmul.f32 8.0, %v435_v33  ;;  %v707_v35 = vpop.f32.mrb[5].mxu1 }
 0x1be   :  { %v444_v36 = vsel %vm286_vm2, %v440_v34, -inf }
 0x1bf   :  { %445 = vmax.xlane.f32.xlu0 %v444_v36 }
 0x248   :  { %v443_v37 = vpop.xlane.xlu0 %442 }
 0x249   :  { %v447_v38 = vsub.f32 %v439_v30, %v443_v37 }
 0x24b   :  { %v449_v39 = vmul.f32 1.442695, %v447_v38 }
 0x24c   :  { %v446_v40 = vpop.xlane.xlu0 %445 }
 0x24d   :  { %747 = vpow2.f32 %v449_v39  ;;  %v448_v41 = vsub.f32 %v440_v34, %v446_v40 }
 0x24f   :  { %v451_v42 = vmul.f32 1.442695, %v448_v41 }
 0x251   :  { %749 = vpow2.f32 %v451_v42 }
 0x257   :  { %v748_v43 = vpop.eup %747 }
 0x258   :  { %v453_v44 = vsel %vm286_vm2, %v748_v43, 0.0 }
 0x259   :  { %454 = vadd.xlane.f32.xlu1 %v453_v44 }
 0x25b   :  { %v750_v45 = vpop.eup %749 }
 0x25c   :  { %v456_v46 = vsel %vm286_vm2, %v750_v45, 0.0 }
 0x25d   :  { %457 = vadd.xlane.f32.xlu1 %v456_v46 }
 0x2e6   :  { %v455_v49 = vpop.xlane.xlu1 %454 }
 0x2e7   :  { %751 = vrcp.f32 %v455_v49 }
 0x2ea   :  { %v458_v50 = vpop.xlane.xlu1 %457 }
 0x2eb   :  { %753 = vrcp.f32 %v458_v50 }
 0x2f1   :  { %v752_v51 = vpop.eup %751 }
 0x2f2   :  { %v460_v52 = vmul.f32 %v752_v51, %v748_v43 }
 0x2f4   :  { %711 = vmatmul.mubr.msk.f32.vlgmr.msra.gmra.mrb[4].mxu0 %vm286_vm2, %v460_v52 }
 0x2f5   :  { %v754_v53 = vpop.eup %753 }
 0x2f6   :  { %v462_v54 = vmul.f32 %v754_v53, %v750_v45 }
 0x2f8   :  { %716 = vmatmul.mubr.msk.f32.vlgmr.msra.gmra.mrb[6].mxu1 %vm286_vm2, %v462_v54 }
 0x3c7   :  { %v532_v55 = vpop.f32.mrb[4].mxu0 }
 0x3c8   :  { %609 = vst.msk [vmem:[#allocation2] sm:$0xff] %vm286_vm2, %v532_v55  ;;  %v712_v56 = vpop.f32.mrb[5].mxu0 }
 0x3cb   :  { %v605_v57 = vpop.f32.mrb[6].mxu1 }
 0x3cc   :  { %610 = vst.msk [vmem:[#allocation2 + $0x8] sm:$0xff] %vm286_vm2, %v605_v57  ;;  %v717_v58 = vpop.f32.mrb[7].mxu1 }
 0x3cd   :  { %766 = shalt.err (!%p763_p4)
}
 0x3ce   :  { %s767_s8 = scalar_lea.hbm %s913_s6, 256 }
 0x3cf   :  { %p768_p5 = scmp.ne.s32.totalorder %s913_s6, %s767_s8  ;;  %p771_p6 = scmp.lt.u32.totalorder %s767_s8, %s913_s6 }
 0x3d1   :  { %p773_p7 = pnand %p771_p6, %p768_p5 }
 0x3d3   :  { %776 = shalt.err (!%p773_p7)
}
 0x3d4   :  { %s782_s13 = smov 128   ;;  %s783_s14 = smov 8  }
 0x3d5   :  { %622 = dma.vmem_to_hbm [thread:$0]  %s617_s5, 256, %s913_s6, [#allocation3], %s782_s13, %s782_s13, %s783_s14  }
 0x3d6   :  { %777 = dma.done.wait [#allocation3], 256  }
 0x3d7   :  { %778 = vsyncadd [#allocation3], 4294967040 }
 0x3d8   :  { %626 = vsyncpa [#allocation3], 1 }

</bundles_post_ra>
